<compile_context>
chip_gen: v7x
topology: tpu7x:2x2x1
jax: 0.10.0
libtpu: 0.0.40
codegen_flags: <defaults>
</compile_context>

<pallas_src>
import numpy as np
import jax
import jax.numpy as jnp
from jax.experimental import pallas as pl
from jax.experimental.pallas import tpu as pltpu

LN_EPS = 1e-5           # torch.nn.LayerNorm default
DEFAULT_BLOCK_B = 1024  # batch rows per grid step (multiple of 8)


def _layernorm_f32(x, gamma, beta):
    # x: (TB, D) f32; gamma/beta: (1, D) f32
    mean = jnp.mean(x, axis=-1, keepdims=True)
    centered = x - mean
    var = jnp.mean(centered * centered, axis=-1, keepdims=True)
    # Fold rsqrt(var+eps) * gamma into a single scale (one VPU mul saved per LN).
    scale = jax.lax.rsqrt(var + LN_EPS) * gamma
    return centered * scale + beta


def actor_kernel(
    x_ref,
    w1_ref, b1_ref, g1_ref, be1_ref,
    w2_ref, b2_ref, g2_ref, be2_ref,
    w3_ref, b3_ref,
    out_ref,
):
    # MXU operands in bf16 (weights already arrive as bf16), accumulate f32.
    x = x_ref[...].astype(jnp.bfloat16)

    # fc1 -> LayerNorm -> ReLU   (all post-matmul math in f32)
    h1 = jnp.dot(x, w1_ref[...], preferred_element_type=jnp.float32) + b1_ref[...]
    h1 = jnp.maximum(_layernorm_f32(h1, g1_ref[...], be1_ref[...]), 0.0)

    # fc2 -> LayerNorm -> ReLU
    h2 = jnp.dot(h1.astype(jnp.bfloat16), w2_ref[...],
                 preferred_element_type=jnp.float32) + b2_ref[...]
    h2 = jnp.maximum(_layernorm_f32(h2, g2_ref[...], be2_ref[...]), 0.0)

    # mu -> tanh (tanh goes to the EUP slot; keep it in f32)
    mu = jnp.dot(h2.astype(jnp.bfloat16), w3_ref[...],
                 preferred_element_type=jnp.float32) + b3_ref[...]
    out_ref[...] = jnp.tanh(mu).astype(out_ref.dtype)


def actor_forward(state, params, *, block_b=DEFAULT_BLOCK_B):
    """state: (B, input_dim) float32. params: dict of weights/biases/LN params."""
    B, input_dim = state.shape
    n_actions = params["w3"].shape[1]

    # Pick the batch tile: whole batch if it is small, otherwise block_b rows
    # (multiple of 8 -> satisfies the sublane constraint) with zero padding.
    if B <= block_b:
        tb, Bp, x = B, B, state
    else:
        tb = block_b
        Bp = pl.cdiv(B, tb) * tb
        x = jnp.pad(state, ((0, Bp - B), (0, 0))) if Bp != B else state
    grid = (Bp // tb,)

    # Pre-cast weights to bf16: MXU-native operand dtype, half the weight DMA.
    w1 = params["w1"].astype(jnp.bfloat16)
    w2 = params["w2"].astype(jnp.bfloat16)
    w3 = params["w3"].astype(jnp.bfloat16)

    vmem = pltpu.MemorySpace.VMEM

    def act_spec(d):
        return pl.BlockSpec((tb, d), lambda i: (i, 0), memory_space=vmem)

    def resident_spec(arr):
        # Full-array block, same block index every step -> stays VMEM-resident.
        return pl.BlockSpec(arr.shape, lambda i: (0, 0), memory_space=vmem)

    out = pl.pallas_call(
        actor_kernel,
        out_shape=jax.ShapeDtypeStruct((Bp, n_actions), jnp.float32),
        grid_spec=pltpu.PrefetchScalarGridSpec(
            num_scalar_prefetch=0,
            grid=grid,
            in_specs=[
                act_spec(input_dim),
                resident_spec(w1), resident_spec(params["b1"]),
                resident_spec(params["g1"]), resident_spec(params["be1"]),
                resident_spec(w2), resident_spec(params["b2"]),
                resident_spec(params["g2"]), resident_spec(params["be2"]),
                resident_spec(w3), resident_spec(params["b3"]),
            ],
            out_specs=pl.BlockSpec((tb, n_actions), lambda i: (i, 0),
                                   memory_space=vmem),
        ),
        compiler_params=pltpu.CompilerParams(
            dimension_semantics=("parallel",),  # lets v7x shard batch over 2 TCs
        ),
    )(
        x,
        w1, params["b1"], params["g1"], params["be1"],
        w2, params["b2"], params["g2"], params["be2"],
        w3, params["b3"],
    )
    return out[:B] if Bp != B else out


def init_params(key, input_dim, fc1_dims, fc2_dims, n_actions):
    """Deterministic init mirroring the module's __init__ scheme.

    PyTorch stores Linear weight as (out, in); we store the transpose (in, out).
    fc1/fc2 use uniform(-1/sqrt(out_features), +1/sqrt(out_features)) per the
    original code (it uses weight.size()[0] == out_features); mu uses +/-0.003.
    LayerNorm weight=1, bias=0 (PyTorch defaults).
    """
    ks = jax.random.split(key, 6)
    f1 = 1.0 / np.sqrt(fc1_dims)
    f2 = 1.0 / np.sqrt(fc2_dims)
    f4 = 0.003
    return {
        "w1": jax.random.uniform(ks[0], (input_dim, fc1_dims), jnp.float32, -f1, f1),
        "b1": jax.random.uniform(ks[1], (1, fc1_dims), jnp.float32, -f1, f1),
        "g1": jnp.ones((1, fc1_dims), jnp.float32),
        "be1": jnp.zeros((1, fc1_dims), jnp.float32),
        "w2": jax.random.uniform(ks[2], (fc1_dims, fc2_dims), jnp.float32, -f2, f2),
        "b2": jax.random.uniform(ks[3], (1, fc2_dims), jnp.float32, -f2, f2),
        "g2": jnp.ones((1, fc2_dims), jnp.float32),
        "be2": jnp.zeros((1, fc2_dims), jnp.float32),
        "w3": jax.random.uniform(ks[4], (fc2_dims, n_actions), jnp.float32, -f4, f4),
        "b3": jax.random.uniform(ks[5], (1, n_actions), jnp.float32, -f4, f4),
    }


def actor_forward_ref(state, params):
    """Pure-JAX f32 reference for correctness check."""
    def ln(x, g, b):
        m = jnp.mean(x, axis=-1, keepdims=True)
        v = jnp.mean((x - m) ** 2, axis=-1, keepdims=True)
        return (x - m) / jnp.sqrt(v + LN_EPS) * g + b

    h1 = jnp.maximum(ln(state @ params["w1"] + params["b1"], params["g1"], params["be1"]), 0.0)
    h2 = jnp.maximum(ln(h1 @ params["w2"] + params["b2"], params["g2"], params["be2"]), 0.0)
    return jnp.tanh(h2 @ params["w3"] + params["b3"])


if __name__ == "__main__":
    # Small shapes consistent with the module: input_dims=(8,), fc1=64, fc2=32,
    # n_actions=4, batch=2.
    batch, input_dim, fc1_dims, fc2_dims, n_actions = 2, 8, 64, 32, 4

    key = jax.random.PRNGKey(0)
    k_state, k_params, k_big = jax.random.split(key, 3)
    state = jax.random.normal(k_state, (batch, input_dim), dtype=jnp.float32)
    params = init_params(k_params, input_dim, fc1_dims, fc2_dims, n_actions)

    # Small-batch path (single grid step, block == full array).
    out = jax.block_until_ready(actor_forward(state, params))
    ref = actor_forward_ref(state, params)
    # bf16 MXU operands => slightly looser tolerance vs. pure-f32 reference.
    np.testing.assert_allclose(np.asarray(out), np.asarray(ref), rtol=5e-2, atol=2e-3)

    # Exercise the gridded + padded batch path (B=300 -> 3 tiles of 128).
    big_state = jax.random.normal(k_big, (300, input_dim), dtype=jnp.float32)
    out_big = jax.block_until_ready(actor_forward(big_state, params, block_b=128))
    ref_big = actor_forward_ref(big_state, params)
    assert out_big.shape == (300, n_actions)
    np.testing.assert_allclose(np.asarray(out_big), np.asarray(ref_big), rtol=5e-2, atol=2e-3)

    print("KERNEL_OK")
</pallas_src>

<mosaic_0001>
module attributes {stable_mosaic.version = 11 : i64} {
  func.func @actor_kernel(%arg0: i32, %arg1: memref<2x8xf32, #tpu.memory_space<vmem>>, %arg2: memref<8x64xbf16, #tpu.memory_space<vmem>>, %arg3: memref<1x64xf32, #tpu.memory_space<vmem>>, %arg4: memref<1x64xf32, #tpu.memory_space<vmem>>, %arg5: memref<1x64xf32, #tpu.memory_space<vmem>>, %arg6: memref<64x32xbf16, #tpu.memory_space<vmem>>, %arg7: memref<1x32xf32, #tpu.memory_space<vmem>>, %arg8: memref<1x32xf32, #tpu.memory_space<vmem>>, %arg9: memref<1x32xf32, #tpu.memory_space<vmem>>, %arg10: memref<32x4xbf16, #tpu.memory_space<vmem>>, %arg11: memref<1x4xf32, #tpu.memory_space<vmem>>, %arg12: memref<2x4xf32, #tpu.memory_space<vmem>>) attributes {dimension_semantics = [#tpu.dimension_semantics<parallel>], iteration_bounds = array<i64: 1>, scalar_prefetch = 0 : i64, scratch_operands = 0 : i64, tpu.core_type = #tpu.core_type<tc>, window_params = [{transform_indices = @transform_0, window_bounds = array<i64: 2, 8>}, {pipeline_mode = #tpu.pipeline_mode<synchronous>, transform_indices = @transform_1, window_bounds = array<i64: 8, 64>}, {pipeline_mode = #tpu.pipeline_mode<synchronous>, transform_indices = @transform_2, window_bounds = array<i64: 1, 64>}, {pipeline_mode = #tpu.pipeline_mode<synchronous>, transform_indices = @transform_3, window_bounds = array<i64: 1, 64>}, {pipeline_mode = #tpu.pipeline_mode<synchronous>, transform_indices = @transform_4, window_bounds = array<i64: 1, 64>}, {pipeline_mode = #tpu.pipeline_mode<synchronous>, transform_indices = @transform_5, window_bounds = array<i64: 64, 32>}, {pipeline_mode = #tpu.pipeline_mode<synchronous>, transform_indices = @transform_6, window_bounds = array<i64: 1, 32>}, {pipeline_mode = #tpu.pipeline_mode<synchronous>, transform_indices = @transform_7, window_bounds = array<i64: 1, 32>}, {pipeline_mode = #tpu.pipeline_mode<synchronous>, transform_indices = @transform_8, window_bounds = array<i64: 1, 32>}, {pipeline_mode = #tpu.pipeline_mode<synchronous>, transform_indices = @transform_9, window_bounds = array<i64: 32, 4>}, {pipeline_mode = #tpu.pipeline_mode<synchronous>, transform_indices = @transform_10, window_bounds = array<i64: 1, 4>}, {transform_indices = @transform_11, window_bounds = array<i64: 2, 4>}]} {
    %c0 = arith.constant 0 : index
    %c0_0 = arith.constant 0 : index
    %0 = vector.load %arg1[%c0, %c0_0] : memref<2x8xf32, #tpu.memory_space<vmem>>, vector<2x8xf32>
    %1 = arith.truncf %0 : vector<2x8xf32> to vector<2x8xbf16>
    %c0_1 = arith.constant 0 : index
    %c0_2 = arith.constant 0 : index
    %2 = vector.load %arg2[%c0_1, %c0_2] : memref<8x64xbf16, #tpu.memory_space<vmem>>, vector<8x64xbf16>
    %cst = arith.constant dense<0.000000e+00> : vector<2x64xf32>
    %3 = tpu.matmul %1, %2, %cst {dimension_numbers = #tpu.dot_dimension_numbers<[1], [0], [0], [1], [0, 0, 1, 1], [], []>} : vector<2x8xbf16>, vector<8x64xbf16>, vector<2x64xf32> -> vector<2x64xf32>
    %c0_3 = arith.constant 0 : index
    %c0_4 = arith.constant 0 : index
    %4 = vector.load %arg3[%c0_3, %c0_4] : memref<1x64xf32, #tpu.memory_space<vmem>>, vector<1x64xf32>
    %5 = vector.broadcast %4 : vector<1x64xf32> to vector<2x64xf32>
    %6 = arith.addf %3, %5 : vector<2x64xf32>
    %c0_5 = arith.constant 0 : index
    %c0_6 = arith.constant 0 : index
    %7 = vector.load %arg4[%c0_5, %c0_6] : memref<1x64xf32, #tpu.memory_space<vmem>>, vector<1x64xf32>
    %c0_7 = arith.constant 0 : index
    %c0_8 = arith.constant 0 : index
    %8 = vector.load %arg5[%c0_7, %c0_8] : memref<1x64xf32, #tpu.memory_space<vmem>>, vector<1x64xf32>
    %cst_9 = arith.constant dense<0.000000e+00> : vector<2xf32>
    %9 = vector.multi_reduction <add>, %6, %cst_9 [1] : vector<2x64xf32> to vector<2xf32>
    %10 = vector.shape_cast %9 : vector<2xf32> to vector<2x1xf32>
    %cst_10 = arith.constant 6.400000e+01 : f32
    %11 = vector.broadcast %cst_10 : f32 to vector<2x1xf32>
    %12 = arith.divf %10, %11 : vector<2x1xf32>
    %13 = vector.broadcast %12 : vector<2x1xf32> to vector<2x64xf32>
    %14 = arith.subf %6, %13 : vector<2x64xf32>
    %15 = arith.mulf %14, %14 : vector<2x64xf32>
    %cst_11 = arith.constant dense<0.000000e+00> : vector<2xf32>
    %16 = vector.multi_reduction <add>, %15, %cst_11 [1] : vector<2x64xf32> to vector<2xf32>
    %17 = vector.shape_cast %16 : vector<2xf32> to vector<2x1xf32>
    %cst_12 = arith.constant 6.400000e+01 : f32
    %18 = vector.broadcast %cst_12 : f32 to vector<2x1xf32>
    %19 = arith.divf %17, %18 : vector<2x1xf32>
    %cst_13 = arith.constant 9.99999974E-6 : f32
    %20 = vector.broadcast %cst_13 : f32 to vector<2x1xf32>
    %21 = arith.addf %19, %20 : vector<2x1xf32>
    %22 = math.rsqrt %21 : vector<2x1xf32>
    %23 = vector.broadcast %22 : vector<2x1xf32> to vector<2x64xf32>
    %24 = vector.broadcast %7 : vector<1x64xf32> to vector<2x64xf32>
    %25 = arith.mulf %23, %24 : vector<2x64xf32>
    %26 = arith.mulf %14, %25 : vector<2x64xf32>
    %27 = vector.broadcast %8 : vector<1x64xf32> to vector<2x64xf32>
    %28 = arith.addf %26, %27 : vector<2x64xf32>
    %cst_14 = arith.constant 0.000000e+00 : f32
    %29 = vector.broadcast %cst_14 : f32 to vector<2x64xf32>
    %30 = arith.maximumf %28, %29 : vector<2x64xf32>
    %31 = arith.truncf %30 : vector<2x64xf32> to vector<2x64xbf16>
    %c0_15 = arith.constant 0 : index
    %c0_16 = arith.constant 0 : index
    %32 = vector.load %arg6[%c0_15, %c0_16] : memref<64x32xbf16, #tpu.memory_space<vmem>>, vector<64x32xbf16>
    %cst_17 = arith.constant dense<0.000000e+00> : vector<2x32xf32>
    %33 = tpu.matmul %31, %32, %cst_17 {dimension_numbers = #tpu.dot_dimension_numbers<[1], [0], [0], [1], [0, 0, 1, 1], [], []>} : vector<2x64xbf16>, vector<64x32xbf16>, vector<2x32xf32> -> vector<2x32xf32>
    %c0_18 = arith.constant 0 : index
    %c0_19 = arith.constant 0 : index
    %34 = vector.load %arg7[%c0_18, %c0_19] : memref<1x32xf32, #tpu.memory_space<vmem>>, vector<1x32xf32>
    %35 = vector.broadcast %34 : vector<1x32xf32> to vector<2x32xf32>
    %36 = arith.addf %33, %35 : vector<2x32xf32>
    %c0_20 = arith.constant 0 : index
    %c0_21 = arith.constant 0 : index
    %37 = vector.load %arg8[%c0_20, %c0_21] : memref<1x32xf32, #tpu.memory_space<vmem>>, vector<1x32xf32>
    %c0_22 = arith.constant 0 : index
    %c0_23 = arith.constant 0 : index
    %38 = vector.load %arg9[%c0_22, %c0_23] : memref<1x32xf32, #tpu.memory_space<vmem>>, vector<1x32xf32>
    %cst_24 = arith.constant dense<0.000000e+00> : vector<2xf32>
    %39 = vector.multi_reduction <add>, %36, %cst_24 [1] : vector<2x32xf32> to vector<2xf32>
    %40 = vector.shape_cast %39 : vector<2xf32> to vector<2x1xf32>
    %cst_25 = arith.constant 3.200000e+01 : f32
    %41 = vector.broadcast %cst_25 : f32 to vector<2x1xf32>
    %42 = arith.divf %40, %41 : vector<2x1xf32>
    %43 = vector.broadcast %42 : vector<2x1xf32> to vector<2x32xf32>
    %44 = arith.subf %36, %43 : vector<2x32xf32>
    %45 = arith.mulf %44, %44 : vector<2x32xf32>
    %cst_26 = arith.constant dense<0.000000e+00> : vector<2xf32>
    %46 = vector.multi_reduction <add>, %45, %cst_26 [1] : vector<2x32xf32> to vector<2xf32>
    %47 = vector.shape_cast %46 : vector<2xf32> to vector<2x1xf32>
    %cst_27 = arith.constant 3.200000e+01 : f32
    %48 = vector.broadcast %cst_27 : f32 to vector<2x1xf32>
    %49 = arith.divf %47, %48 : vector<2x1xf32>
    %cst_28 = arith.constant 9.99999974E-6 : f32
    %50 = vector.broadcast %cst_28 : f32 to vector<2x1xf32>
    %51 = arith.addf %49, %50 : vector<2x1xf32>
    %52 = math.rsqrt %51 : vector<2x1xf32>
    %53 = vector.broadcast %52 : vector<2x1xf32> to vector<2x32xf32>
    %54 = vector.broadcast %37 : vector<1x32xf32> to vector<2x32xf32>
    %55 = arith.mulf %53, %54 : vector<2x32xf32>
    %56 = arith.mulf %44, %55 : vector<2x32xf32>
    %57 = vector.broadcast %38 : vector<1x32xf32> to vector<2x32xf32>
    %58 = arith.addf %56, %57 : vector<2x32xf32>
    %cst_29 = arith.constant 0.000000e+00 : f32
    %59 = vector.broadcast %cst_29 : f32 to vector<2x32xf32>
    %60 = arith.maximumf %58, %59 : vector<2x32xf32>
    %61 = arith.truncf %60 : vector<2x32xf32> to vector<2x32xbf16>
    %c0_30 = arith.constant 0 : index
    %c0_31 = arith.constant 0 : index
    %62 = vector.load %arg10[%c0_30, %c0_31] : memref<32x4xbf16, #tpu.memory_space<vmem>>, vector<32x4xbf16>
    %cst_32 = arith.constant dense<0.000000e+00> : vector<2x4xf32>
    %63 = tpu.matmul %61, %62, %cst_32 {dimension_numbers = #tpu.dot_dimension_numbers<[1], [0], [0], [1], [0, 0, 1, 1], [], []>} : vector<2x32xbf16>, vector<32x4xbf16>, vector<2x4xf32> -> vector<2x4xf32>
    %c0_33 = arith.constant 0 : index
    %c0_34 = arith.constant 0 : index
    %64 = vector.load %arg11[%c0_33, %c0_34] : memref<1x4xf32, #tpu.memory_space<vmem>>, vector<1x4xf32>
    %65 = vector.broadcast %64 : vector<1x4xf32> to vector<2x4xf32>
    %66 = arith.addf %63, %65 : vector<2x4xf32>
    %67 = math.tanh %66 : vector<2x4xf32>
    %c0_35 = arith.constant 0 : index
    %c0_36 = arith.constant 0 : index
    %68 = vector.load %arg12[%c0_35, %c0_36] : memref<2x4xf32, #tpu.memory_space<vmem>>, vector<2x4xf32>
    tpu.vector_store %arg12[%c0_35, %c0_36], %67 {strides = array<i32>} : memref<2x4xf32, #tpu.memory_space<vmem>>, vector<2x4xf32>,
    return
  }
  func.func @transform_0(%arg0: i32) -> (i32, i32) {
    %c0_i32 = arith.constant 0 : i32
    %c0_i32_0 = arith.constant 0 : i32
    return %arg0, %c0_i32 : i32, i32
  }
  func.func @transform_1(%arg0: i32) -> (i32, i32) {
    %c0_i32 = arith.constant 0 : i32
    %c0_i32_0 = arith.constant 0 : i32
    %c0_i32_1 = arith.constant 0 : i32
    return %c0_i32, %c0_i32_0 : i32, i32
  }
  func.func @transform_2(%arg0: i32) -> (i32, i32) {
    %c0_i32 = arith.constant 0 : i32
    %c0_i32_0 = arith.constant 0 : i32
    %c0_i32_1 = arith.constant 0 : i32
    return %c0_i32, %c0_i32_0 : i32, i32
  }
  func.func @transform_3(%arg0: i32) -> (i32, i32) {
    %c0_i32 = arith.constant 0 : i32
    %c0_i32_0 = arith.constant 0 : i32
    %c0_i32_1 = arith.constant 0 : i32
    return %c0_i32, %c0_i32_0 : i32, i32
  }
  func.func @transform_4(%arg0: i32) -> (i32, i32) {
    %c0_i32 = arith.constant 0 : i32
    %c0_i32_0 = arith.constant 0 : i32
    %c0_i32_1 = arith.constant 0 : i32
    return %c0_i32, %c0_i32_0 : i32, i32
  }
  func.func @transform_5(%arg0: i32) -> (i32, i32) {
    %c0_i32 = arith.constant 0 : i32
    %c0_i32_0 = arith.constant 0 : i32
    %c0_i32_1 = arith.constant 0 : i32
    return %c0_i32, %c0_i32_0 : i32, i32
  }
  func.func @transform_6(%arg0: i32) -> (i32, i32) {
    %c0_i32 = arith.constant 0 : i32
    %c0_i32_0 = arith.constant 0 : i32
    %c0_i32_1 = arith.constant 0 : i32
    return %c0_i32, %c0_i32_0 : i32, i32
  }
  func.func @transform_7(%arg0: i32) -> (i32, i32) {
    %c0_i32 = arith.constant 0 : i32
    %c0_i32_0 = arith.constant 0 : i32
    %c0_i32_1 = arith.constant 0 : i32
    return %c0_i32, %c0_i32_0 : i32, i32
  }
  func.func @transform_8(%arg0: i32) -> (i32, i32) {
    %c0_i32 = arith.constant 0 : i32
    %c0_i32_0 = arith.constant 0 : i32
    %c0_i32_1 = arith.constant 0 : i32
    return %c0_i32, %c0_i32_0 : i32, i32
  }
  func.func @transform_9(%arg0: i32) -> (i32, i32) {
    %c0_i32 = arith.constant 0 : i32
    %c0_i32_0 = arith.constant 0 : i32
    %c0_i32_1 = arith.constant 0 : i32
    return %c0_i32, %c0_i32_0 : i32, i32
  }
  func.func @transform_10(%arg0: i32) -> (i32, i32) {
    %c0_i32 = arith.constant 0 : i32
    %c0_i32_0 = arith.constant 0 : i32
    %c0_i32_1 = arith.constant 0 : i32
    return %c0_i32, %c0_i32_0 : i32, i32
  }
  func.func @transform_11(%arg0: i32) -> (i32, i32) {
    %c0_i32 = arith.constant 0 : i32
    %c0_i32_0 = arith.constant 0 : i32
    return %arg0, %c0_i32 : i32, i32
  }
}

</mosaic_0001>

<bundles_post_ra>
// kernel: tpu_custom_call.1
= control target key start
LH: loop header
LB: loop body
LE: loop exit
PB: predicated region body
PF: predicated region fallthrough
CT: control target
= control target key end

     0   :  { %vm54_vm0 = vcmask 1043456   ;;  %v422_v1 = vmov 0.0   ;;  %vm423_vm1 = vmmov 0   ;;  %vm50_vm2 = vcmask 64512   ;;  %s552_s0 = inlined_call_operand.vmem [shape: f32[2,8], index: 0, kind: input, shape index: {}]   ;;  %s553_s1 = inlined_call_operand.vmem [shape: bf16[8,64], index: 1, kind: input, shape index: {}]   ;;  %s554_s2 = inlined_call_operand.vmem [shape: f32[1,64], index: 2, kind: input, shape index: {}]   ;;  %s555_s3 = inlined_call_operand.vmem [shape: f32[1,64], index: 3, kind: input, shape index: {}]   ;;  %s556_s4 = inlined_call_operand.vmem [shape: f32[1,64], index: 4, kind: input, shape index: {}]   ;;  %s557_s5 = inlined_call_operand.vmem [shape: bf16[64,32], index: 5, kind: input, shape index: {}]   ;;  %s558_s6 = inlined_call_operand.vmem [shape: f32[1,32], index: 6, kind: input, shape index: {}]   ;;  %s559_s7 = inlined_call_operand.vmem [shape: f32[1,32], index: 7, kind: input, shape index: {}]   ;;  %s560_s8 = inlined_call_operand.vmem [shape: f32[1,32], index: 8, kind: input, shape index: {}]   ;;  %s561_s9 = inlined_call_operand.vmem [shape: bf16[32,4], index: 9, kind: input, shape index: {}]   ;;  %s562_s10 = inlined_call_operand.vmem [shape: f32[1,4], index: 10, kind: input, shape index: {}]   ;;  %s563_s11 = inlined_call_operand.hbm [shape: f32[2,4], index: 11, kind: output, shape index: {}]  }
   0x1   :  { %v42_v0 = vld [vmem:[%s553_s1] sm:$0xf]  ;;  %357 = vmatprep.subr.bf16.mxu0 %v422_v1  ;;  %359 = vmatprep.mubr.msk.bf16.mxu0 %vm423_vm1, %v422_v1 }
   0x2   :  { %v56_v2 = vsel %vm54_vm0, %v42_v0, 0  ;;  %v40_v3 = vld [vmem:[%s552_s0] sm:$0x3]  ;;  %363 = vmatprep.subr.bf16.mxu1 %v422_v1  ;;  %371 = vmatprep.mubr.msk.bf16.mxu1 %vm423_vm1, %v422_v1 }
   0x3   :  { %358 = vmatpush3.bf16.msra.mxu0 %v56_v2  ;;  %v41_v4 = vpack.c.bf16 %v40_v3, %v40_v3 }
   0x4   :  { %375 = vmatprep.subr.bf16.mxu0 %v422_v1 }
   0x6   :  { %360 = vmatmul.mubr.msk.bf16.vlgmr.msra.gmra.mrb[0].mxu0 %vm50_vm2, %v41_v4 }
   0x7   :  { %379 = vmatprep.mubr.msk.bf16.mxu0 %vm423_vm1, %v422_v1 }
   0x8   :  { %16 = vsyncpa [#allocation3], 0  ;;  %v331_v5 = vld [vmem:[%s554_s2] ss:$0 sm:$0xff]  ;;  %vm100_vm3 = vcmask 517120   ;;  %v387_v18 = vld [vmem:[%s557_s5 + $0x8] sm:$0xff]  }
   0x9   :  { %v386_v17 = vld [vmem:[%s557_s5] sm:$0xff]   ;;  %v388_v19 = vld [vmem:[%s557_s5 + $0x10] sm:$0xff]   ;;  %v389_v20 = vld [vmem:[%s557_s5 + $0x18] sm:$0xff]   ;;  %vm170_vm4 = vcmask 523264   ;;  %vm216_vm5 = vcmask 254976   ;;  %vm270_vm6 = vcmask 261120  }
   0xa   :  { %364 = vmatpush3.bf16.msra.mxu1 %v386_v17  ;;  %v333_v24 = vld [vmem:[%s555_s3] ss:$0 sm:$0xff]  ;;  %v391_v45 = vld [vmem:[%s561_s9 + $0x8] sm:$0xff]   ;;  %vm315_vm7 = vcmask 25600  }
   0xb   :  { %365 = vmatprep.subr.bf16.mxu1 %v422_v1  ;;  %v334_v27 = vld [vmem:[%s556_s4] ss:$0 sm:$0xff] }
   0xc   :  { %v335_v32 = vld [vmem:[%s558_s6] ss:$0 sm:$0xff] }
   0xd   :  { %v390_v44 = vld [vmem:[%s561_s9] sm:$0xff]  }
   0xe   :  { %366 = vmatpush3.bf16.msra.mxu1 %v387_v18  ;;  %376 = vmatpush3.bf16.msra.mxu0 %v390_v44  ;;  %v341_v49 = vld [vmem:[%s559_s7] ss:$0 sm:$0xff]  ;;  %s424_s7 = smov [#allocation2]  }
   0xf   :  { %367 = vmatprep.subr.bf16.mxu1 %v422_v1  ;;  %377 = vmatprep.subr.bf16.mxu0 %v422_v1  ;;  %v342_v52 = vld [vmem:[%s560_s8] ss:$0 sm:$0xff]  ;;  %s323_s20 = sshll.u32 %s424_s7, 4  ;;  %s324_s20 = int_to_ptr.vmem [resolvable:$true] %s323_s20 }
  0x10   :  { %v343_v57 = vld [vmem:[%s562_s10] ss:$0 sm:$0xff]  ;;  %s398_s8 = scalar_lea.vmem %s324_s20, 32  ;;  %p403_p1 = scmp.lt.s32.totalorder %s324_s20, %s324_s20 }
  0x11   :  { %p399_p0 = scmp.ne.s32.totalorder %s324_s20, %s398_s8  ;;  %p404_p2 = scmp.lt.s32.totalorder %s398_s8, %s398_s8 }
  0x12   :  { %368 = vmatpush3.bf16.msra.mxu1 %v388_v19  ;;  %378 = vmatpush3.bf16.msra.mxu0 %v391_v45 }
  0x13   :  { %369 = vmatprep.subr.bf16.mxu1 %v422_v1  ;;  %p405_p3 = por %p404_p2, %p403_p1 }
  0x15   :  { %p406_p4 = pnand %p405_p3, %p399_p0 }
  0x16   :  { %370 = vmatpush3.bf16.msra.mxu1 %v389_v20 }
  0xd9   :  { %v92_v6 = vpop.f32.mrb[0].mxu0 }
  0xda   :  { %v93_v7 = vadd.f32 %v331_v5, %v92_v6  ;;  %v361_v8 = vpop.f32.mrb[1].mxu0 }
  0xdb   :  { %v95_v9 = vpop.f32.mrb[2].mxu0 }
  0xdc   :  { %v362_v10 = vpop.f32.mrb[3].mxu0  ;;  %v101_v11 = vsel %vm100_vm3, %v93_v7, 0.0 }
  0xdd   :  { %102 = vadd.xlane.f32.xlu0 %v101_v11 }
 0x16a   :  { %v103_v12 = vpop.xlane.xlu0 %102 }
 0x16b   :  { %v105_v13 = vmul.f32 0.015625, %v103_v12 }
 0x16d   :  { %v106_v14 = vsub.f32 %v93_v7, %v105_v13 }
 0x16f   :  { %v107_v15 = vmul.f32 %v106_v14, %v106_v14 }
 0x171   :  { %v108_v16 = vsel %vm100_vm3, %v107_v15, 0.0 }
 0x172   :  { %109 = vadd.xlane.f32.xlu0 %v108_v16 }
 0x1ff   :  { %v110_v21 = vpop.xlane.xlu0 %109 }
 0x200   :  { %v111_v22 = vmul.f32 0.015625, %v110_v21 }
 0x202   :  { %v112_v23 = vadd.f32 1e-05, %v111_v22 }
 0x204   :  { %392 = vrsqrt.f32 %v112_v23 }
 0x20e   :  { %v393_v25 = vpop.eup %392 }
 0x20f   :  { %v120_v26 = vmul.f32 %v393_v25, %v333_v24 }
 0x211   :  { %v121_v28 = vmul.f32 %v120_v26, %v106_v14 }
 0x213   :  { %v128_v29 = vadd.f32 %v334_v27, %v121_v28 }
 0x215   :  { %v129_v30 = vmax.f32 %v128_v29, 0.0 }
 0x217   :  { %v130_v31 = vpack.c.bf16 %v129_v30, %v129_v30 }
 0x219   :  { %372 = vmatmul.mubr.msk.bf16.vlgmr.msra.gmra.mrb[0].mxu1 %vm170_vm4, %v130_v31 }
 0x2ec   :  { %v208_v33 = vpop.f32.mrb[0].mxu1 }
 0x2ed   :  { %v209_v34 = vadd.f32 %v335_v32, %v208_v33  ;;  %v373_v35 = vpop.f32.mrb[1].mxu1 }
 0x2ee   :  { %v211_v36 = vpop.f32.mrb[2].mxu1 }
 0x2ef   :  { %v374_v37 = vpop.f32.mrb[3].mxu1  ;;  %v217_v38 = vsel %vm216_vm5, %v209_v34, 0.0 }
 0x2f0   :  { %218 = vadd.xlane.f32.xlu1 %v217_v38 }
 0x37d   :  { %v219_v39 = vpop.xlane.xlu1 %218 }
 0x37e   :  { %v221_v40 = vmul.f32 0.03125, %v219_v39 }
 0x380   :  { %v222_v41 = vsub.f32 %v209_v34, %v221_v40 }
 0x382   :  { %v223_v42 = vmul.f32 %v222_v41, %v222_v41 }
 0x384   :  { %v224_v43 = vsel %vm216_vm5, %v223_v42, 0.0 }
 0x385   :  { %225 = vadd.xlane.f32.xlu1 %v224_v43 }
 0x412   :  { %v226_v46 = vpop.xlane.xlu1 %225 }
 0x413   :  { %v227_v47 = vmul.f32 0.03125, %v226_v46 }
 0x415   :  { %v228_v48 = vadd.f32 1e-05, %v227_v47 }
 0x417   :  { %394 = vrsqrt.f32 %v228_v48 }
 0x421   :  { %v395_v50 = vpop.eup %394 }
 0x422   :  { %v236_v51 = vmul.f32 %v395_v50, %v341_v49 }
 0x424   :  { %v237_v53 = vmul.f32 %v236_v51, %v222_v41 }
 0x426   :  { %v244_v54 = vadd.f32 %v342_v52, %v237_v53 }
 0x428   :  { %v245_v55 = vmax.f32 %v244_v54, 0.0 }
 0x42a   :  { %v246_v56 = vpack.c.bf16 %v245_v55, %v245_v55 }
 0x42c   :  { %380 = vmatmul.mubr.msk.bf16.vlgmr.msra.gmra.mrb[4].mxu0 %vm270_vm6, %v246_v56 }
 0x4ff   :  { %v308_v58 = vpop.f32.mrb[4].mxu0 }
 0x500   :  { %v309_v59 = vadd.f32 %v343_v57, %v308_v58  ;;  %v381_v60 = vpop.f32.mrb[5].mxu0 }
 0x501   :  { %v311_v61 = vpop.f32.mrb[6].mxu0 }
 0x502   :  { %396 = vtanh.f32 %v309_v59  ;;  %v382_v62 = vpop.f32.mrb[7].mxu0 }
 0x50c   :  { %v397_v63 = vpop.eup %396 }
 0x50d   :  { %316 = vst.msk [vmem:[#allocation2] sm:$0x3] %vm315_vm7, %v397_v63 }
 0x50e   :  { %409 = shalt.err (!%p406_p4)
}
 0x50f   :  { %s410_s21 = scalar_lea.hbm %s563_s11, 32 }
 0x510   :  { %p411_p5 = scmp.ne.s32.totalorder %s563_s11, %s410_s21  ;;  %p414_p6 = scmp.lt.u32.totalorder %s410_s21, %s563_s11 }
 0x512   :  { %p416_p7 = pnand %p414_p6, %p411_p5 }
 0x514   :  { %419 = shalt.err (!%p416_p7)
}
 0x515   :  { %326 = dma.vmem_to_hbm [thread:$0]  %s324_s20, 32, %s563_s11, [#allocation3]  }
 0x516   :  { %420 = dma.done.wait [#allocation3], 32  }
 0x517   :  { %421 = vsyncadd [#allocation3], 4294967264 }
 0x518   :  { %330 = vsyncpa [#allocation3], 1 }

</bundles_post_ra>
